<compile_context>
chip_gen: v6e
topology: v6e:2x2x1
jax: 0.10.0
libtpu: 0.0.40
codegen_flags: <defaults>
</compile_context>

<pallas_src>
import functools
import math

import jax
import jax.numpy as jnp
from jax import lax
from jax.experimental import pallas as pl
from jax.experimental.pallas import tpu as pltpu

_EPS = 1e-12  # torch.nn.functional.normalize default eps

_TM_MAX = 256            # batch-tile rows  (multiple of 8)
_TN_MAX = 512            # class-tile cols  (multiple of 128 -> lane-dense vst)
_TILE_BUDGET = 40 << 20  # bytes allowed for double-buffered f32 tiles


def _round_up(v, m):
    return ((v + m - 1) // m) * m


def _ntsoftmax_kernel(x_ref, wn_ref, o_ref):
    """One (TM, TN) output tile: x rows vs pre-normalized/scaled class vectors."""
    x = x_ref[...]        # [TM, D] f32
    wn = wn_ref[...]      # [TN, D] f32, already (||w||-normalized) / temperature

    # Row-wise inverse L2 norm of x:
    # rsqrt(max(sumsq, eps^2)) == 1 / max(||x||, eps)  (torch semantics).
    sumsq = jnp.sum(x * x, axis=-1, keepdims=True)                   # [TM, 1]
    scale = lax.rsqrt(jnp.maximum(sumsq, _EPS * _EPS))               # EUP slot
    xs = x * scale                                                   # [TM, D]

    # MXU matmul: contract the last (lane) dim of both operands directly,
    # no materialized transpose of the weight tile.
    o_ref[...] = lax.dot_general(
        xs, wn,
        dimension_numbers=(((1,), (1,)), ((), ())),
        preferred_element_type=jnp.float32,
    )


def ntsoftmax_forward(x, weight_vectors, temperature=1.0):
    """x: [N, D], weight_vectors: [C, D] -> logits [N, C] (float32)."""
    n, d = x.shape
    c, d2 = weight_vectors.shape
    assert d == d2, "embed_dim mismatch"

    x32 = x.astype(jnp.float32)
    w32 = weight_vectors.astype(jnp.float32)

    # Hoist class-vector normalization out of the kernel grid (done once,
    # amortized over every batch tile) and fold in 1/temperature for free.
    w_sumsq = jnp.sum(w32 * w32, axis=-1, keepdims=True)
    w_scale = lax.rsqrt(jnp.maximum(w_sumsq, _EPS * _EPS)) * float(1.0 / temperature)
    wn = w32 * w_scale

    # Tile sizes: (8, 128)-aligned blocks, shrunk if needed so double-buffered
    # f32 tiles (x + w + out) stay within the VMEM budget.
    tm = min(_TM_MAX, _round_up(n, 8))
    tn = min(_TN_MAX, _round_up(c, 128))

    def step_bytes(tm_, tn_):
        return 2 * (tm_ * d + tn_ * d + tm_ * tn_) * 4  # double-buffered f32

    while step_bytes(tm, tn) > _TILE_BUDGET and tn > 128:
        tn = _round_up(tn // 2, 128)
    while step_bytes(tm, tn) > _TILE_BUDGET and tm > 8:
        tm = _round_up(tm // 2, 8)

    n_pad = _round_up(n, tm)
    c_pad = _round_up(c, tn)
    if n_pad != n:
        x32 = jnp.pad(x32, ((0, n_pad - n), (0, 0)))
    if c_pad != c:
        wn = jnp.pad(wn, ((0, c_pad - c), (0, 0)))

    grid = (n_pad // tm, c_pad // tn)  # class-tile axis innermost: x tile stays resident

    vmem_limit = int(min(max(step_bytes(tm, tn) + (8 << 20), 32 << 20), 48 << 20))

    # x is DMA'd once per batch tile (block index constant across the inner
    # class-tile axis); W is DMA'd once per (batch tile, class tile) pair.
    cost = pl.CostEstimate(
        flops=2 * n_pad * c_pad * d + 3 * n_pad * d * grid[1],
        transcendentals=n_pad * grid[1],
        bytes_accessed=4 * (n_pad * d + grid[0] * c_pad * d + n_pad * c_pad),
    )

    out = pl.pallas_call(
        _ntsoftmax_kernel,
        out_shape=jax.ShapeDtypeStruct((n_pad, c_pad), jnp.float32),
        grid=grid,
        in_specs=[
            pl.BlockSpec((tm, d), lambda i, j: (i, 0),
                         memory_space=pltpu.MemorySpace.VMEM),
            pl.BlockSpec((tn, d), lambda i, j: (j, 0),
                         memory_space=pltpu.MemorySpace.VMEM),
        ],
        out_specs=pl.BlockSpec((tm, tn), lambda i, j: (i, j),
                               memory_space=pltpu.MemorySpace.VMEM),
        compiler_params=pltpu.CompilerParams(
            dimension_semantics=("parallel", "parallel"),
            vmem_limit_bytes=vmem_limit,
        ),
        cost_estimate=cost,
    )(x32, wn)

    if (n_pad, c_pad) != (n, c):
        out = out[:n, :c]
    return out
    # TODO(synk): for extremely large embed_dim (D so big a single row tile
    # can't fit VMEM), add a third ("arbitrary") grid axis over D with an f32
    # VMEM accumulator + per-K-tile sum-of-squares; not needed for typical
    # embed_dim (e.g. 768).


def _reference(x, w, temperature):
    xn = x / jnp.maximum(jnp.linalg.norm(x, axis=-1, keepdims=True), _EPS)
    wn = w / jnp.maximum(jnp.linalg.norm(w, axis=-1, keepdims=True), _EPS)
    return (xn @ wn.T) / temperature


if __name__ == "__main__":
    # Small, deterministic setup consistent with the module's __init__:
    # (num_classes, embed_dim) weight matrix, Kaiming-uniform style init.
    batch = 8
    embed_dim = 32
    num_classes = 16
    temperature = 0.5

    key = jax.random.PRNGKey(0)
    kx, kw = jax.random.split(key)

    x = jax.random.normal(kx, (batch, embed_dim), dtype=jnp.float32)

    # kaiming_uniform_(a=sqrt(5)) on (num_classes, embed_dim):
    # bound = sqrt(6 / ((1 + a^2) * fan_in)) = sqrt(1 / embed_dim)
    bound = math.sqrt(1.0 / embed_dim)
    weight_vectors = jax.random.uniform(
        kw, (num_classes, embed_dim), dtype=jnp.float32,
        minval=-bound, maxval=bound,
    )

    fwd = jax.jit(functools.partial(ntsoftmax_forward, temperature=temperature))
    out = jax.block_until_ready(fwd(x, weight_vectors))

    ref = _reference(x, weight_vectors, temperature)
    assert out.shape == (batch, num_classes)
    assert jnp.allclose(out, ref, atol=1e-5, rtol=1e-4), "mismatch vs reference"

    print("KERNEL_OK")
</pallas_src>

<mosaic_0001>
module attributes {stable_mosaic.version = 11 : i64} {
  func.func @_ntsoftmax_kernel(%arg0: i32, %arg1: i32, %arg2: memref<8x32xf32, #tpu.memory_space<vmem>>, %arg3: memref<128x32xf32, #tpu.memory_space<vmem>>, %arg4: memref<8x128xf32, #tpu.memory_space<vmem>>) attributes {dimension_semantics = [#tpu.dimension_semantics<parallel>, #tpu.dimension_semantics<parallel>], iteration_bounds = array<i64: 1, 1>, scalar_prefetch = 0 : i64, scratch_operands = 0 : i64, tpu.core_type = #tpu.core_type<tc>, window_params = [{transform_indices = @transform_0, window_bounds = array<i64: 8, 32>}, {transform_indices = @transform_1, window_bounds = array<i64: 128, 32>}, {transform_indices = @transform_2, window_bounds = array<i64: 8, 128>}]} {
    %c0 = arith.constant 0 : index
    %c0_0 = arith.constant 0 : index
    %0 = vector.load %arg2[%c0, %c0_0] : memref<8x32xf32, #tpu.memory_space<vmem>>, vector<8x32xf32>
    %c0_1 = arith.constant 0 : index
    %c0_2 = arith.constant 0 : index
    %1 = vector.load %arg3[%c0_1, %c0_2] : memref<128x32xf32, #tpu.memory_space<vmem>>, vector<128x32xf32>
    %2 = arith.mulf %0, %0 : vector<8x32xf32>
    %cst = arith.constant dense<0.000000e+00> : vector<8xf32>
    %3 = vector.multi_reduction <add>, %2, %cst [1] : vector<8x32xf32> to vector<8xf32>
    %4 = vector.shape_cast %3 : vector<8xf32> to vector<8x1xf32>
    %cst_3 = arith.constant 1.000000e-24 : f32
    %5 = vector.broadcast %cst_3 : f32 to vector<8x1xf32>
    %6 = arith.maximumf %4, %5 : vector<8x1xf32>
    %7 = math.rsqrt %6 : vector<8x1xf32>
    %8 = vector.broadcast %7 : vector<8x1xf32> to vector<8x32xf32>
    %9 = arith.mulf %0, %8 : vector<8x32xf32>
    %cst_4 = arith.constant dense<0.000000e+00> : vector<8x128xf32>
    %10 = tpu.matmul %9, %1, %cst_4 {dimension_numbers = #tpu.dot_dimension_numbers<[1], [1], [0], [0], [0, 0, 1, 0], [], []>} : vector<8x32xf32>, vector<128x32xf32>, vector<8x128xf32> -> vector<8x128xf32>
    %c0_5 = arith.constant 0 : index
    %c0_6 = arith.constant 0 : index
    %11 = vector.load %arg4[%c0_5, %c0_6] : memref<8x128xf32, #tpu.memory_space<vmem>>, vector<8x128xf32>
    tpu.vector_store %arg4[%c0_5, %c0_6], %10 {strides = array<i32>} : memref<8x128xf32, #tpu.memory_space<vmem>>, vector<8x128xf32>,
    return
  }
  func.func @transform_0(%arg0: i32, %arg1: i32) -> (i32, i32) {
    %c0_i32 = arith.constant 0 : i32
    %c0_i32_0 = arith.constant 0 : i32
    return %arg0, %c0_i32 : i32, i32
  }
  func.func @transform_1(%arg0: i32, %arg1: i32) -> (i32, i32) {
    %c0_i32 = arith.constant 0 : i32
    %c0_i32_0 = arith.constant 0 : i32
    return %arg1, %c0_i32 : i32, i32
  }
  func.func @transform_2(%arg0: i32, %arg1: i32) -> (i32, i32) {
    %c0_i32 = arith.constant 0 : i32
    return %arg0, %arg1 : i32, i32
  }
}

</mosaic_0001>

<bundles_post_ra>
// kernel: ntsoftmax_forward.1
= control target key start
LH: loop header
LB: loop body
LE: loop exit
PB: predicated region body
PF: predicated region fallthrough
CT: control target
= control target key end

     0   :  { %vm30_vm0 = vcmask 261120   ;;  %v269_v3 = vmov 0.0   ;;  %s359_s0 = inlined_call_operand.vmem [shape: f32[8,32], index: 0, kind: input, shape index: {}]   ;;  %s360_s1 = inlined_call_operand.vmem [shape: f32[128,32], index: 1, kind: input, shape index: {}]   ;;  %s361_s2 = inlined_call_operand.hbm [shape: f32[8,128], index: 2, kind: output, shape index: {}]  }
   0x1   :  { %v12_v0 = vld [vmem:[%s359_s0] sm:$0xff]  ;;  %v28_v1 = vld [vmem:[%s360_s1 + $0x78] sm:$0xff]  ;;  %207 = vmatprep.subr.mxu0 %v269_v3  ;;  %v27_v5 = vld [vmem:[%s360_s1 + $0x70] sm:$0xff] }
   0x2   :  { %v29_v2 = vmul.f32 %v12_v0, %v12_v0  ;;  %208 = vmatpush3.xpose.msk.msra.mxu0 %vm30_vm0, %v28_v1 }
   0x3   :  { %209 = vmatprep.subr.mxu0 %v269_v3 }
   0x4   :  { %v31_v4 = vsel %vm30_vm0, %v29_v2, 0.0 }
   0x5   :  { %32 = vadd.xlane.f32.xlu0 %v31_v4 }
   0x6   :  { %7 = vsyncpa [#allocation3], 0  ;;  %210 = vmatpush3.xpose.msk.msra.mxu0 %vm30_vm0, %v27_v5  ;;  %v26_v6 = vld [vmem:[%s360_s1 + $0x68] sm:$0xff]  ;;  %v25_v7 = vld [vmem:[%s360_s1 + $0x60] sm:$0xff]  ;;  %vm270_vm1 = vmmov 0   ;;  %s271_s14 = smov [#allocation2]  }
   0x7   :  { %211 = vmatprep.subr.mxu0 %v269_v3  ;;  %v24_v8 = vld [vmem:[%s360_s1 + $0x58] sm:$0xff]  ;;  %239 = vmatprep.mubr.msk.f32.mxu0 %vm270_vm1, %v269_v3  ;;  %v23_v9 = vld [vmem:[%s360_s1 + $0x50] sm:$0xff]  ;;  %v22_v10 = vld [vmem:[%s360_s1 + $0x48] sm:$0xff]  ;;  %s165_s0 = sshll.u32 %s271_s14, 4  ;;  %s166_s0 = int_to_ptr.vmem [resolvable:$true] %s165_s0 }
   0x8   :  { %v21_v11 = vld [vmem:[%s360_s1 + $0x40] sm:$0xff]  ;;  %v20_v12 = vld [vmem:[%s360_s1 + $0x38] sm:$0xff]  ;;  %v19_v13 = vld [vmem:[%s360_s1 + $0x30] sm:$0xff]  ;;  %s247_s15 = scalar_lea.vmem %s166_s0, 128  ;;  %p252_p1 = scmp.lt.s32.totalorder %s166_s0, %s166_s0 }
   0x9   :  { %v18_v14 = vld [vmem:[%s360_s1 + $0x28] sm:$0xff]  ;;  %v17_v15 = vld [vmem:[%s360_s1 + $0x20] sm:$0xff]  ;;  %v16_v16 = vld [vmem:[%s360_s1 + $0x18] sm:$0xff]  ;;  %p248_p0 = scmp.ne.s32.totalorder %s166_s0, %s247_s15  ;;  %p253_p2 = scmp.lt.s32.totalorder %s247_s15, %s247_s15 }
   0xa   :  { %212 = vmatpush3.xpose.msk.msra.mxu0 %vm30_vm0, %v26_v6  ;;  %v15_v17 = vld [vmem:[%s360_s1 + $0x10] sm:$0xff]  ;;  %v14_v18 = vld [vmem:[%s360_s1 + $0x8] sm:$0xff]  ;;  %v13_v19 = vld [vmem:[%s360_s1] sm:$0xff] }
   0xb   :  { %213 = vmatprep.subr.mxu0 %v269_v3  ;;  %p254_p3 = por %p253_p2, %p252_p1 }
   0xd   :  { %p255_p4 = pnand %p254_p3, %p248_p0 }
   0xe   :  { %214 = vmatpush3.xpose.msk.msra.mxu0 %vm30_vm0, %v25_v7 }
   0xf   :  { %215 = vmatprep.subr.mxu0 %v269_v3 }
  0x12   :  { %216 = vmatpush3.xpose.msk.msra.mxu0 %vm30_vm0, %v24_v8 }
  0x13   :  { %217 = vmatprep.subr.mxu0 %v269_v3 }
  0x16   :  { %218 = vmatpush3.xpose.msk.msra.mxu0 %vm30_vm0, %v23_v9 }
  0x17   :  { %219 = vmatprep.subr.mxu0 %v269_v3 }
  0x1a   :  { %220 = vmatpush3.xpose.msk.msra.mxu0 %vm30_vm0, %v22_v10 }
  0x1b   :  { %221 = vmatprep.subr.mxu0 %v269_v3 }
  0x1e   :  { %222 = vmatpush3.xpose.msk.msra.mxu0 %vm30_vm0, %v21_v11 }
  0x1f   :  { %223 = vmatprep.subr.mxu0 %v269_v3 }
  0x22   :  { %224 = vmatpush3.xpose.msk.msra.mxu0 %vm30_vm0, %v20_v12 }
  0x23   :  { %225 = vmatprep.subr.mxu0 %v269_v3 }
  0x26   :  { %226 = vmatpush3.xpose.msk.msra.mxu0 %vm30_vm0, %v19_v13 }
  0x27   :  { %227 = vmatprep.subr.mxu0 %v269_v3 }
  0x2a   :  { %228 = vmatpush3.xpose.msk.msra.mxu0 %vm30_vm0, %v18_v14 }
  0x2b   :  { %229 = vmatprep.subr.mxu0 %v269_v3 }
  0x2e   :  { %230 = vmatpush3.xpose.msk.msra.mxu0 %vm30_vm0, %v17_v15 }
  0x2f   :  { %231 = vmatprep.subr.mxu0 %v269_v3 }
  0x32   :  { %232 = vmatpush3.xpose.msk.msra.mxu0 %vm30_vm0, %v16_v16 }
  0x33   :  { %233 = vmatprep.subr.mxu0 %v269_v3 }
  0x36   :  { %234 = vmatpush3.xpose.msk.msra.mxu0 %vm30_vm0, %v15_v17 }
  0x37   :  { %235 = vmatprep.subr.mxu0 %v269_v3 }
  0x3a   :  { %236 = vmatpush3.xpose.msk.msra.mxu0 %vm30_vm0, %v14_v18 }
  0x3b   :  { %237 = vmatprep.subr.mxu0 %v269_v3 }
  0x3e   :  { %238 = vmatpush3.xpose.msk.msra.mxu0 %vm30_vm0, %v13_v19 }
  0x8e   :  { %v33_v20 = vpop.xlane.xlu0 %32 }
  0x8f   :  { %v34_v21 = vmax.f32 %v33_v20, 1e-24 }
  0x91   :  { %245 = vrsqrt.f32 %v34_v21 }
  0x9e   :  { %v246_v22 = vpop.eup %245 }
  0x9f   :  { %v36_v23 = vmul.f32 %v246_v22, %v12_v0 }
  0xa1   :  { %240 = vmatmul.mubr.msk.f32.vlgmr.msra.gmra.mxu0 %vm30_vm0, %v36_v23 }
 0x161   :  { %v154_v24 = vpop.f32.mrf.mxu0 }
 0x162   :  { %158 = vst [vmem:[#allocation2] sm:$0xff] %v154_v24 }
 0x163   :  { %v241_v25 = vpop.f32.mrf.mxu0 }
 0x164   :  { %258 = shalt.err (!%p255_p4)
}
 0x165   :  { %168 = dma.vmem_to_hbm [thread:$0]  %s166_s0, 128, %s361_s2, [#allocation3]  }
 0x166   :  { %267 = dma.done.wait [#allocation3], 128  }
 0x167   :  { %268 = vsyncadd [#allocation3], 4294967168 }
 0x168   :  { %172 = vsyncpa [#allocation3], 1 }

</bundles_post_ra>
